<compile_context>
chip_gen: v7x
topology: tpu7x:2x2x1
jax: 0.10.0
libtpu: 0.0.40
codegen_flags: <defaults>
</compile_context>

<pallas_src>
import jax
import jax.numpy as jnp
from jax.experimental import pallas as pl
from jax.experimental.pallas import tpu as pltpu


def _se_kernel(x_ref, w1t_ref, b1_ref, w2_ref, b2_ref, o_ref):
    # x_ref, o_ref: (Bt, C, HW)
    # w1t_ref: (C, Cs)  conv_reduce weight transposed to (in, out)
    # b1_ref:  (1, Cs)
    # w2_ref:  (C, Cs)  conv_expand weight in its native (out, in) layout
    # b2_ref:  (C, 1)
    xf = x_ref[...].astype(jnp.float32)

    # --- squeeze: global average pool over the spatial (lane) dim -> column.
    mean = jnp.mean(xf, axis=2, keepdims=True)                       # (Bt, C, 1)

    # --- conv_reduce (1x1 conv == channel linear) + SiLU, on VPU/XLU.
    #     s1[b, s] = sum_c mean[b, c] * w1t[c, s]
    p1 = mean * w1t_ref[...][None, :, :]                             # (Bt, C, Cs)
    s1 = jnp.sum(p1, axis=1, keepdims=True) + b1_ref[...][None]      # (Bt, 1, Cs)
    s1 = s1 * jax.nn.sigmoid(s1)                                     # SiLU

    # --- conv_expand + Sigmoid, producing the scale column directly.
    #     s2[b, c] = sum_s s1[b, s] * w2[c, s]
    p2 = s1 * w2_ref[...][None, :, :]                                # (Bt, C, Cs)
    s2 = jnp.sum(p2, axis=2, keepdims=True) + b2_ref[...][None]      # (Bt, C, 1)
    scale = jax.nn.sigmoid(s2)                                       # (Bt, C, 1)

    # --- excite: per-(batch, channel) rescale broadcast over spatial lanes.
    o_ref[...] = (xf * scale).astype(o_ref.dtype)


def _pick_batch_tile(B, C, HW, itemsize,
                     target_block_bytes=2 << 20,     # ~2 MiB blocks hit ~85% of HBM BW
                     vmem_budget_bytes=12 << 20):    # 4x double-buffered copies <= 12 MiB
    """Images per grid step: big enough to amortize per-step overhead, small
    enough that in/out double-buffering fits even v5e's 16 MiB scoped VMEM,
    while keeping >= 2 grid steps so v7x uses both TensorCores."""
    per_image = max(1, C * HW * itemsize)
    bt = max(1, min(target_block_bytes // per_image,
                    vmem_budget_bytes // (4 * per_image),
                    B))
    if B >= 2:
        bt = min(bt, pl.cdiv(B, 2))
    bt = int(bt)
    # Make bt divide B so every block is full (no partial edge blocks).
    while B % bt:
        bt -= 1
    return bt


def squeeze_excite(x, w1, b1, w2, b2):
    """x: (B, C, H, W). Flattened 1x1-conv params:
       w1: (Cs, C), b1: (Cs,)  [conv_reduce];  w2: (C, Cs), b2: (C,)  [conv_expand]."""
    B, C, H, W = x.shape
    Cs = w1.shape[0]
    HW = H * W
    itemsize = jnp.dtype(x.dtype).itemsize

    x_flat = x.reshape(B, C, HW)
    # Reorient the tiny weights outside the kernel (trace-time, negligible cost)
    # so all in-kernel contractions are plain broadcast-multiply + reductions.
    w1t = jnp.transpose(w1).astype(jnp.float32)      # (C, Cs)
    b1r = b1.reshape(1, Cs).astype(jnp.float32)      # (1, Cs)
    w2f = w2.astype(jnp.float32)                     # (C, Cs)
    b2c = b2.reshape(C, 1).astype(jnp.float32)       # (C, 1)

    # TODO(synk): for very large per-image slabs (C*HW*4 approaching the VMEM
    # budget, e.g. early EffNetV2 stages on v7x), switch to a two-phase
    # reduce-then-apply structure tiled over HW instead of this single-slab design.
    bt = _pick_batch_tile(B, C, HW, itemsize)
    grid = (B // bt,)

    cost = pl.CostEstimate(
        flops=2 * B * C * HW + 4 * B * C * Cs,
        transcendentals=B * (C + Cs),
        bytes_accessed=2 * B * C * HW * itemsize,
    )

    out = pl.pallas_call(
        _se_kernel,
        out_shape=jax.ShapeDtypeStruct((B, C, HW), x.dtype),
        grid_spec=pltpu.PrefetchScalarGridSpec(
            num_scalar_prefetch=0,
            grid=grid,
            in_specs=[
                pl.BlockSpec((bt, C, HW), lambda b: (b, 0, 0)),
                pl.BlockSpec(w1t.shape, lambda b: (0, 0)),
                pl.BlockSpec(b1r.shape, lambda b: (0, 0)),
                pl.BlockSpec(w2f.shape, lambda b: (0, 0)),
                pl.BlockSpec(b2c.shape, lambda b: (0, 0)),
            ],
            out_specs=pl.BlockSpec((bt, C, HW), lambda b: (b, 0, 0)),
        ),
        compiler_params=pltpu.CompilerParams(
            dimension_semantics=("parallel",),
            vmem_limit_bytes=32 * 1024 * 1024,
        ),
        cost_estimate=cost,
    )(x_flat, w1t, b1r, w2f, b2c)

    return out.reshape(B, C, H, W)


def reference(x, w1, b1, w2, b2):
    """Pure-JAX reference matching the PyTorch module."""
    xf = x.astype(jnp.float32)
    mean = xf.mean(axis=(2, 3), keepdims=True)                            # (B,C,1,1)
    s = jnp.einsum("sc,bcij->bsij", w1, mean) + b1.reshape(1, -1, 1, 1)
    s = s * jax.nn.sigmoid(s)                                             # SiLU
    s = jnp.einsum("cs,bsij->bcij", w2, s) + b2.reshape(1, -1, 1, 1)
    s = jax.nn.sigmoid(s)
    return (s * xf).astype(x.dtype)


if __name__ == "__main__":
    # Module hyperparameters, consistent with the PyTorch constructor:
    input_c, expand_c, se_ratio = 16, 32, 0.25
    squeeze_c = int(input_c * se_ratio)        # 4
    B, H, W = 2, 16, 16                        # HW = 256 (lane-dense)

    key = jax.random.PRNGKey(0)
    kx, k1, k2, k3, k4 = jax.random.split(key, 5)

    x = jax.random.normal(kx, (B, expand_c, H, W), dtype=jnp.float32)

    # nn.Conv2d(expand_c, squeeze_c, 1).weight: (squeeze_c, expand_c, 1, 1) -> (out, in)
    w1 = 0.1 * jax.random.normal(k1, (squeeze_c, expand_c), dtype=jnp.float32)
    b1 = 0.1 * jax.random.normal(k2, (squeeze_c,), dtype=jnp.float32)
    w2 = 0.1 * jax.random.normal(k3, (expand_c, squeeze_c), dtype=jnp.float32)
    b2 = 0.1 * jax.random.normal(k4, (expand_c,), dtype=jnp.float32)

    out = jax.block_until_ready(squeeze_excite(x, w1, b1, w2, b2))
    ref = jax.block_until_ready(reference(x, w1, b1, w2, b2))

    assert out.shape == x.shape and out.dtype == x.dtype
    assert jnp.allclose(out, ref, atol=1e-5, rtol=1e-5)
    print("KERNEL_OK")
</pallas_src>

<mosaic_0001>
module attributes {stable_mosaic.version = 11 : i64} {
  func.func @_se_kernel(%arg0: i32, %arg1: memref<1x32x256xf32, #tpu.memory_space<vmem>>, %arg2: memref<32x4xf32, #tpu.memory_space<vmem>>, %arg3: memref<1x4xf32, #tpu.memory_space<vmem>>, %arg4: memref<32x4xf32, #tpu.memory_space<vmem>>, %arg5: memref<32x1xf32, #tpu.memory_space<vmem>>, %arg6: memref<1x32x256xf32, #tpu.memory_space<vmem>>) attributes {dimension_semantics = [#tpu.dimension_semantics<parallel>], iteration_bounds = array<i64: 2>, scalar_prefetch = 0 : i64, scratch_operands = 0 : i64, tpu.core_type = #tpu.core_type<tc>, window_params = [{transform_indices = @transform_0, window_bounds = array<i64: 1, 32, 256>}, {pipeline_mode = #tpu.pipeline_mode<synchronous>, transform_indices = @transform_1, window_bounds = array<i64: 32, 4>}, {pipeline_mode = #tpu.pipeline_mode<synchronous>, transform_indices = @transform_2, window_bounds = array<i64: 1, 4>}, {pipeline_mode = #tpu.pipeline_mode<synchronous>, transform_indices = @transform_3, window_bounds = array<i64: 32, 4>}, {pipeline_mode = #tpu.pipeline_mode<synchronous>, transform_indices = @transform_4, window_bounds = array<i64: 32, 1>}, {transform_indices = @transform_5, window_bounds = array<i64: 1, 32, 256>}]} {
    %c0 = arith.constant 0 : index
    %c0_0 = arith.constant 0 : index
    %c0_1 = arith.constant 0 : index
    %0 = vector.load %arg1[%c0, %c0_0, %c0_1] : memref<1x32x256xf32, #tpu.memory_space<vmem>>, vector<1x32x256xf32>
    %cst = arith.constant dense<0.000000e+00> : vector<1x32xf32>
    %1 = vector.multi_reduction <add>, %0, %cst [2] : vector<1x32x256xf32> to vector<1x32xf32>
    %2 = vector.shape_cast %1 : vector<1x32xf32> to vector<1x32x1xf32>
    %cst_2 = arith.constant 2.560000e+02 : f32
    %3 = vector.broadcast %cst_2 : f32 to vector<1x32x1xf32>
    %4 = arith.divf %2, %3 : vector<1x32x1xf32>
    %c0_3 = arith.constant 0 : index
    %c0_4 = arith.constant 0 : index
    %5 = vector.load %arg2[%c0_3, %c0_4] : memref<32x4xf32, #tpu.memory_space<vmem>>, vector<32x4xf32>
    %6 = vector.shape_cast %5 : vector<32x4xf32> to vector<1x32x4xf32>
    %7 = vector.broadcast %4 : vector<1x32x1xf32> to vector<1x32x4xf32>
    %8 = arith.mulf %7, %6 : vector<1x32x4xf32>
    %cst_5 = arith.constant dense<0.000000e+00> : vector<1x4xf32>
    %9 = vector.multi_reduction <add>, %8, %cst_5 [1] : vector<1x32x4xf32> to vector<1x4xf32>
    %10 = vector.shape_cast %9 : vector<1x4xf32> to vector<1x1x4xf32>
    %c0_6 = arith.constant 0 : index
    %c0_7 = arith.constant 0 : index
    %11 = vector.load %arg3[%c0_6, %c0_7] : memref<1x4xf32, #tpu.memory_space<vmem>>, vector<1x4xf32>
    %12 = vector.shape_cast %11 : vector<1x4xf32> to vector<1x1x4xf32>
    %13 = arith.addf %10, %12 : vector<1x1x4xf32>
    %14 = arith.negf %13 : vector<1x1x4xf32>
    %15 = math.exp %14 : vector<1x1x4xf32>
    %cst_8 = arith.constant 1.000000e+00 : f32
    %16 = vector.broadcast %cst_8 : f32 to vector<1x1x4xf32>
    %17 = arith.addf %16, %15 : vector<1x1x4xf32>
    %18 = arith.divf %16, %17 : vector<1x1x4xf32>
    %19 = arith.mulf %13, %18 : vector<1x1x4xf32>
    %c0_9 = arith.constant 0 : index
    %c0_10 = arith.constant 0 : index
    %20 = vector.load %arg4[%c0_9, %c0_10] : memref<32x4xf32, #tpu.memory_space<vmem>>, vector<32x4xf32>
    %21 = vector.shape_cast %20 : vector<32x4xf32> to vector<1x32x4xf32>
    %22 = vector.broadcast %19 : vector<1x1x4xf32> to vector<1x32x4xf32>
    %23 = arith.mulf %22, %21 : vector<1x32x4xf32>
    %cst_11 = arith.constant dense<0.000000e+00> : vector<1x32xf32>
    %24 = vector.multi_reduction <add>, %23, %cst_11 [2] : vector<1x32x4xf32> to vector<1x32xf32>
    %25 = vector.shape_cast %24 : vector<1x32xf32> to vector<1x32x1xf32>
    %c0_12 = arith.constant 0 : index
    %c0_13 = arith.constant 0 : index
    %26 = vector.load %arg5[%c0_12, %c0_13] : memref<32x1xf32, #tpu.memory_space<vmem>>, vector<32x1xf32>
    %27 = vector.shape_cast %26 : vector<32x1xf32> to vector<1x32x1xf32>
    %28 = arith.addf %25, %27 : vector<1x32x1xf32>
    %29 = arith.negf %28 : vector<1x32x1xf32>
    %30 = math.exp %29 : vector<1x32x1xf32>
    %cst_14 = arith.constant 1.000000e+00 : f32
    %31 = vector.broadcast %cst_14 : f32 to vector<1x32x1xf32>
    %32 = arith.addf %31, %30 : vector<1x32x1xf32>
    %33 = arith.divf %31, %32 : vector<1x32x1xf32>
    %34 = vector.broadcast %33 : vector<1x32x1xf32> to vector<1x32x256xf32>
    %35 = arith.mulf %0, %34 : vector<1x32x256xf32>
    %c0_15 = arith.constant 0 : index
    %c0_16 = arith.constant 0 : index
    %c0_17 = arith.constant 0 : index
    %36 = vector.load %arg6[%c0_15, %c0_16, %c0_17] : memref<1x32x256xf32, #tpu.memory_space<vmem>>, vector<1x32x256xf32>
    tpu.vector_store %arg6[%c0_15, %c0_16, %c0_17], %35 {strides = array<i32>} : memref<1x32x256xf32, #tpu.memory_space<vmem>>, vector<1x32x256xf32>,
    return
  }
  func.func @transform_0(%arg0: i32) -> (i32, i32, i32) {
    %c0_i32 = arith.constant 0 : i32
    %c0_i32_0 = arith.constant 0 : i32
    %c0_i32_1 = arith.constant 0 : i32
    return %arg0, %c0_i32, %c0_i32_0 : i32, i32, i32
  }
  func.func @transform_1(%arg0: i32) -> (i32, i32) {
    %c0_i32 = arith.constant 0 : i32
    %c0_i32_0 = arith.constant 0 : i32
    %c0_i32_1 = arith.constant 0 : i32
    return %c0_i32, %c0_i32_0 : i32, i32
  }
  func.func @transform_2(%arg0: i32) -> (i32, i32) {
    %c0_i32 = arith.constant 0 : i32
    %c0_i32_0 = arith.constant 0 : i32
    %c0_i32_1 = arith.constant 0 : i32
    return %c0_i32, %c0_i32_0 : i32, i32
  }
  func.func @transform_3(%arg0: i32) -> (i32, i32) {
    %c0_i32 = arith.constant 0 : i32
    %c0_i32_0 = arith.constant 0 : i32
    %c0_i32_1 = arith.constant 0 : i32
    return %c0_i32, %c0_i32_0 : i32, i32
  }
  func.func @transform_4(%arg0: i32) -> (i32, i32) {
    %c0_i32 = arith.constant 0 : i32
    %c0_i32_0 = arith.constant 0 : i32
    %c0_i32_1 = arith.constant 0 : i32
    return %c0_i32, %c0_i32_0 : i32, i32
  }
  func.func @transform_5(%arg0: i32) -> (i32, i32, i32) {
    %c0_i32 = arith.constant 0 : i32
    %c0_i32_0 = arith.constant 0 : i32
    %c0_i32_1 = arith.constant 0 : i32
    return %arg0, %c0_i32, %c0_i32_0 : i32, i32, i32
  }
}

</mosaic_0001>

<bundles_post_ra>
// kernel: tpu_custom_call.1
= control target key start
LH: loop header
LB: loop body
LE: loop exit
PB: predicated region body
PF: predicated region fallthrough
CT: control target
= control target key end

     0   :  { %10 = vsyncpa [#allocation3], 0  ;;  %s952_s0 = inlined_call_operand.hbm [shape: f32[2,32,256], index: 0, kind: input, shape index: {}]   ;;  %s953_s1 = inlined_call_operand.vmem [shape: f32[32,4], index: 1, kind: input, shape index: {}]   ;;  %s954_s2 = inlined_call_operand.vmem [shape: f32[1,4], index: 2, kind: input, shape index: {}]   ;;  %s955_s3 = inlined_call_operand.vmem [shape: f32[32,4], index: 3, kind: input, shape index: {}]   ;;  %s956_s4 = inlined_call_operand.vmem [shape: f32[32,1], index: 4, kind: input, shape index: {}]   ;;  %s957_s5 = inlined_call_operand.hbm [shape: f32[2,32,256], index: 5, kind: output, shape index: {}]  }
   0x1   :  { %12 = vsyncpa [#allocation3 + $0x1], 0 }
   0x2   :  { %13 = vsyncpa [#allocation4], 0 }
   0x3   :  { %15 = vsyncpa [#allocation4 + $0x1], 0  ;;  %s707_s18 = smov 0   ;;  %s709_s19 = smov 0  }
   0x4   :  { %s711_s20 = smov 0   ;;  %s713_s21 = smov 0  }
   0x5 LB: > { %s728_s22 = sadd.s32 4294967295, %s668_s21   ;;  %s478_s23 = sadd.s32 4294967294, %s668_s21   ;;  %s668_s21 = sphi %s713_s21, %s970_s21   ;;  %s664_s20 = sphi %s711_s20, %s969_s20   ;;  %s660_s19 = sphi %s709_s19, %s968_s19   ;;  %s656_s18 = sphi %s707_s18, %s967_s18  }
   0x6   : > { %s732_s24 = sadd.s32 1, %s668_s21   ;;  %s28_s25 = sadd.s32 1, %s664_s20 }
   0x7   : > { %s25_s26 = ssub.s32 %s668_s21, %s732_s24  ;;  %p35_p0 = scmp.ne.s32.totalorder %s664_s20, %s660_s19 }
   0x8   : > { %p26_p1 = scmp.eq.s32.totalorder %s25_s26, 0  ;;  %p36_p2 = scmp.eq.s32.totalorder %s668_s21, 0 }
   0x9   : > { %p41_p3 = scmp.ne.s32.totalorder %s660_s19, %s656_s18  ;;  %p42_p4 = scmp.eq.s32.totalorder %s728_s22, 0 }
   0xa   : > { %s744_s27 = scalar_select %p26_p1, %s664_s20, %s28_s25  }
   0xb   : > { %p746_p5 = por %p36_p2, %p35_p0  ;;  %p750_p6 = por %p42_p4, %p41_p3 }
   0xc   : > { %p149_p7 = scmp.eq.s32.totalorder %s728_s22, 1  ;;  %p155_p8 = scmp.eq.s32.totalorder %s478_s23, 1 }
   0xd   : > { %p511_p10 = scmp.lt.s32.totalorder %s668_s21, 2  ;;  %s187_s7 = sand.u32 1, %s664_s20  }
   0xe   : > { %p757_p11 = por %p149_p7, %p35_p0  ;;  %p761_p12 = por %p155_p8, %p41_p3 }
   0xf   : > { %s497_s8 = sshll.u32 %s668_s21, 10  ;;  %s481_s9 = sshll.u32 %s187_s7, 6 }
  0x10   : > { %s961_s30 = scalar_select %p757_p11, 1, 0 }
  0x11   : > { %s962_s6 = scalar_select %p761_p12, 1, 0 }
  0x12   : > { %s770_s12 = scalar_lea.hbm %s952_s0, %s497_s8  ;;  %s191_s13 = scalar_lea.vmem [#allocation2], %s481_s9 }
  0x13   : > { %s198_s14 = sshll.u32 %s191_s13, 4  ;;  %p774_p13 = pnand %p511_p10, %p746_p5  ;;  %s778_s14 = int_to_ptr.vmem [resolvable:$true] %s198_s14 }
  0x14   : > { %s780_s16 = scalar_lea.sflag [#allocation3], %s187_s7  ;;  %s572_s17 = scalar_lea.hbm %s770_s12, 1024 }
  0x15   : > { %p573_p0 = scmp.ne.s32.totalorder %s770_s12, %s572_s17  ;;  %p574_p1 = pneg %p774_p13 }
  0x16   : > { %s577_s26 = scalar_lea.hbm %s952_s0, 2048  ;;  %p578_p4 = scmp.lt.u32.totalorder %s770_s12, %s952_s0 }
  0x17   : > { %p575_p2 = pnand %p574_p1, %p573_p0  ;;  %p579_p5 = scmp.lt.u32.totalorder %s577_s26, %s572_s17 }
  0x18   : > { %p581_p8 = scmp.lt.u32.totalorder %s572_s17, %s770_s12 }
  0x19   : > { %p576_p3 = pneg %p575_p2  ;;  %p580_p7 = por %p579_p5, %p578_p4 }
  0x1b   : > { %p582_p10 = por %p581_p8, %p580_p7 }
  0x1d   : > { %p583_p9 = pnand %p582_p10, %p576_p3 }
  0x1f   : > { %586 = shalt.err (!%p583_p9)
}
  0x20   : > { %s587_s7 = scalar_lea.vmem %s778_s14, 1024  ;;  %s670_s9 = smov [#allocation2]  }
  0x21   : > { %p588_p0 = scmp.ne.s32.totalorder %s778_s14, %s587_s7  ;;  %s592_s10 = sshll.u32 %s670_s9, 4  ;;  %s593_s10 = int_to_ptr.vmem [resolvable:$false] %s592_s10 }
  0x22   : > { %s594_s11 = scalar_lea.vmem %s593_s10, 2048  ;;  %p595_p11 = scmp.lt.s32.totalorder %s778_s14, %s593_s10 }
  0x23   : > { %p590_p2 = pnand %p588_p0, %p574_p1  ;;  %p596_p4 = scmp.lt.s32.totalorder %s594_s11, %s587_s7 }
  0x25   : > { %p591_p12 = pneg %p590_p2  ;;  %p597_p5 = por %p596_p4, %p595_p11 }
  0x27   : > { %p598_p7 = pnand %p597_p5, %p591_p12 }
  0x29   : > { %601 = shalt.err (!%p598_p7)
}
  0x2a   : > { %s671_s13 = smov 256   ;;  %s672_s17 = smov 16  }
  0x2b   : > { %506 = dma.hbm_to_vmem [thread:$0]  (!%p774_p13), %s770_s12, 1024, %s778_s14, %s780_s16, %s671_s13, %s671_s13, %s672_s17  }
  0x2c   : > { %p484_p9 = scmp.ge.s32.totalorder %s668_s21, 1  ;;  %p206_p1 = scmp.lt.s32.totalorder %s668_s21, 3 }
  0x2e   : > { %p207_p3 = pnand %p484_p9, %p206_p1 }
  0x2f   : > { %s811_s23 = sand.u32 (!%p207_p3), 1, %s660_s19  }
  0x30   : > { %210 = sbr.rel (%p207_p3) target bundleno = 587 (0x24b), region = 40  ;;  %s485_s25 = sshll.u32 (!%p207_p3), %s811_s23, 6 }
  0x31   : > { %s213_s26 = scalar_lea.sflag (!%p207_p3), [#allocation3], %s811_s23  ;;  %s216_s28 = scalar_lea.vmem (!%p207_p3), [#allocation2], %s485_s25 }
  0x37   : > { %647 = dma.done.wait (%p750_p6), %s213_s26, 1024  }
  0x38   : > { %649 = vsyncadd (%p750_p6), %s213_s26, 4294966272  ;;  %v821_v0 = vld [vmem:[%s216_s28] sm:$0xff]  ;;  %v823_v1 = vld [vmem:[%s216_s28 + $0x8] sm:$0xff]  ;;  %vm276_vm0 = vcmask 31744   ;;  %v303_v46 = vlaneseq  ;;  %s242_s26 = scalar_lea.vmem [#allocation5], %s485_s25  ;;  %s498_s29 = sshll.u32 %s728_s22, 10 }
  0x39   : > { %v825_v2 = vld [vmem:[%s216_s28 + $0x20] sm:$0xff]  ;;  %v251_v3 = vadd.f32 %v823_v1, %v821_v0  ;;  %v829_v4 = vld [vmem:[%s216_s28 + $0x28] sm:$0xff]  ;;  %v831_v5 = vld [vmem:[%s216_s28 + $0x10] sm:$0xff]  ;;  %s906_s14 = scalar_lea.hbm %s957_s5, %s498_s29  ;;  %s392_s22 = scalar_lea.sflag [#allocation4], %s811_s23 }
  0x3a   : > { %v833_v6 = vld [vmem:[%s216_s28 + $0x18] sm:$0xff]  ;;  %v257_v7 = vadd.f32 %v829_v4, %v825_v2  ;;  %v837_v8 = vld [vmem:[%s216_s28 + $0x30] sm:$0xff]  ;;  %v268_v15 = vld [vmem:[%s953_s1] sm:$0xff]  ;;  %v304_v47 = vshrl.u32 %v303_v46, 7  ;;  %p964_p11 = scmp.ne.s32.totalorder %s961_s30, 0  ;;  %s674_s16 = smov [#allocation5]  }
  0x3b   : > { %v839_v9 = vld [vmem:[%s216_s28 + $0x38] sm:$0xff]  ;;  %252 = vadd.xlane.f32.xlu0 %v251_v3  ;;  %v254_v10 = vadd.f32 %v833_v6, %v831_v5  ;;  %v270_v17 = vld [vmem:[%s953_s1 + $0x10] sm:$0xff]  ;;  %v269_v18 = vld [vmem:[%s953_s1 + $0x8] sm:$0xff]  ;;  %v673_v3 = vmov 0   ;;  %s405_s28 = sshll.u32 %s242_s26, 4  ;;  %s606_s8 = sshll.u32 %s674_s16, 4  ;;  %s901_s28 = int_to_ptr.vmem [resolvable:$true] %s405_s28  ;;  %s607_s8 = int_to_ptr.vmem [resolvable:$false] %s606_s8 }
  0x3c   : > { %258 = vadd.xlane.f32.xlu1 %v257_v7  ;;  %v260_v11 = vadd.f32 %v839_v9, %v837_v8  ;;  %v271_v22 = vld [vmem:[%s953_s1 + $0x18] sm:$0xff]  ;;  %v290_v40 = vld [vmem:[%s954_s2] sm:$0x1]  ;;  %v305_v48 = vsub.s32 0, %v304_v47  ;;  %v300_v51 = vld [vmem:[%s955_s3 + $0x8] sm:$0xff]  ;;  %550 = vset.pattern.permute.xlu0 %v673_v3  ;;  %s602_s15 = scalar_lea.vmem %s901_s28, 1024  ;;  %p609_p8 = scmp.lt.s32.totalorder %s901_s28, %s607_s8 }
  0x3d   : > { %v299_v52 = vld [vmem:[%s955_s3] sm:$0xff]  ;;  %v302_v54 = vld [vmem:[%s955_s3 + $0x18] sm:$0xff]  ;;  %v301_v55 = vld [vmem:[%s955_s3 + $0x10] sm:$0xff]  ;;  %551 = vset.pattern.permute.xlu1 %v673_v3  ;;  %p603_p6 = scmp.ne.s32.totalorder %s901_s28, %s602_s15  ;;  %s608_s7 = scalar_lea.vmem %s607_s8, 2048 }
  0x3e   : > { %v324_v7 = vld [vmem:[%s956_s4 + $0x8] sm:$0xff]  ;;  %p610_p10 = scmp.lt.s32.totalorder %s608_s7, %s602_s15 }
  0x3f   : > { %255 = vadd.xlane.f32.xlu0 %v254_v10  ;;  %v323_v10 = vld [vmem:[%s956_s4] sm:$0xff]  ;;  %p604_p12 = pnand %p603_p6, %p964_p11 }
  0x40   : > { %261 = vadd.xlane.f32.xlu1 %v260_v11  ;;  %p611_p0 = por %p610_p10, %p609_p8 }
  0x41   : > { %p605_p13 = pneg %p604_p12 }
  0x43   : > { %p612_p2 = pnand %p611_p0, %p605_p13 }
  0xc8   : > { %v253_v12 = vpop.xlane.xlu0 %252 }
  0xc9   : > { %v264_v13 = vmul.f32 0.00390625, %v253_v12  ;;  %v259_v14 = vpop.xlane.xlu1 %258 }
  0xca   : > { %v266_v16 = vmul.f32 0.00390625, %v259_v14 }
  0xcb   : > { %v272_v20 = vmul.f32 %v268_v15, %v264_v13  ;;  %v326_v15 = vld [vmem:[%s956_s4 + $0x18] sm:$0xff] }
  0xcc   : > { %v256_v19 = vpop.xlane.xlu0 %255  ;;  %v274_v25 = vmul.f32 %v270_v17, %v266_v16  ;;  %v325_v16 = vld [vmem:[%s956_s4 + $0x10] sm:$0xff] }
  0xcd   : > { %v265_v21 = vmul.f32 0.00390625, %v256_v19  ;;  %v262_v23 = vpop.xlane.xlu1 %261  ;;  %v277_v28 = vsel %vm276_vm0, %v272_v20, 0.0 }
  0xce   : > { %v267_v24 = vmul.f32 0.00390625, %v262_v23  ;;  %v280_v31 = vsel %vm276_vm0, %v274_v25, 0.0 }
  0xcf   : > { %v273_v26 = vmul.f32 %v269_v18, %v265_v21 }
  0xd0   : > { %v275_v27 = vmul.f32 %v271_v22, %v267_v24 }
  0xd1   : > { %v278_v29 = vsel %vm276_vm0, %v273_v26, 0.0 }
  0xd2   : > { %v279_v30 = vadd.f32 %v278_v29, %v277_v28  ;;  %v282_v32 = vsel %vm276_vm0, %v275_v27, 0.0 }
  0xd4   : > { %v281_v33 = vadd.f32 %v280_v31, %v279_v30 }
  0xd6   : > { %v283_v34 = vadd.f32 %v282_v32, %v281_v33 }
  0xd8   : > { %v284_v35 = vrot.slane %v283_v34, 4 }
  0xda   : > { %v285_v36 = vadd.f32 %v284_v35, %v283_v34 }
  0xdc   : > { %v286_v37 = vrot.slane %v285_v36, 2 }
  0xde   : > { %v287_v38 = vadd.f32 %v286_v37, %v285_v36 }
  0xe0   : > { %v288_v39 = vrot.slane %v287_v38, 1 }
  0xe2   : > { %v289_v41 = vadd.f32 %v288_v39, %v287_v38 }
  0xe4   : > { %v291_v42 = vadd.f32 %v290_v40, %v289_v41 }
  0xe6   : > { %v487_v43 = vmul.f32 -1.442695, %v291_v42 }
  0xe8   : > { %552 = vpow2.f32 %v487_v43 }
  0xf2   : > { %v553_v44 = vpop.eup %552 }
  0xf3   : > { %v295_v45 = vadd.f32 1.0, %v553_v44 }
  0xf5   : > { %554 = vrcp.f32 %v295_v45 }
  0xff   : > { %v555_v49 = vpop.eup %554 }
 0x100   : > { %v298_v50 = vmul.f32 %v555_v49, %v291_v42 }
 0x102   : > { %v306_v53 = vrot.slane %v298_v50, %v305_v48 }
 0x104   : > { %v308_v56 = vmul.f32 %v306_v53, %v300_v51  ;;  %v307_v57 = vmul.f32 %v306_v53, %v299_v52  ;;  %v310_v60 = vmul.f32 %v306_v53, %v302_v54  ;;  %v309_v61 = vmul.f32 %v306_v53, %v301_v55 }
 0x106   : > { %v314_v58 = vsel %vm276_vm0, %v308_v56, 0.0  ;;  %v311_v59 = vsel %vm276_vm0, %v307_v57, 0.0  ;;  %v320_v62 = vsel %vm276_vm0, %v310_v60, 0.0  ;;  %v317_v63 = vsel %vm276_vm0, %v309_v61, 0.0 }
 0x107   : > { %315 = vadd.xlane.f32.xlu1 %v314_v58  ;;  %312 = vadd.xlane.f32.xlu0 %v311_v59 }
 0x10b   : > { %321 = vadd.xlane.f32.xlu1 %v320_v62  ;;  %318 = vadd.xlane.f32.xlu0 %v317_v63 }
 0x194   : > { %v316_v11 = vpop.xlane.xlu1 %315  ;;  %v313_v12 = vpop.xlane.xlu0 %312 }
 0x195   : > { %v328_v13 = vadd.f32 %v324_v7, %v316_v11  ;;  %v327_v14 = vadd.f32 %v323_v10, %v313_v12 }
 0x197   : > { %v489_v17 = vmul.f32 -1.442695, %v328_v13  ;;  %v488_v18 = vmul.f32 -1.442695, %v327_v14 }
 0x198   : > { %v322_v19 = vpop.xlane.xlu1 %321  ;;  %v319_v20 = vpop.xlane.xlu0 %318 }
 0x199   : > { %556 = vpow2.f32 %v489_v17  ;;  %v330_v21 = vadd.f32 %v326_v15, %v322_v19  ;;  %v329_v22 = vadd.f32 %v325_v16, %v319_v20 }
 0x19a   : > { %558 = vpow2.f32 %v488_v18 }
 0x19b   : > { %v491_v23 = vmul.f32 -1.442695, %v330_v21  ;;  %v490_v24 = vmul.f32 -1.442695, %v329_v22 }
 0x19d   : > { %560 = vpow2.f32 %v491_v23 }
 0x19e   : > { %562 = vpow2.f32 %v490_v24 }
 0x1a3   : > { %v557_v25 = vpop.eup %556 }
 0x1a4   : > { %v559_v26 = vpop.eup %558  ;;  %v344_v27 = vadd.f32 1.0, %v557_v25 }
 0x1a5   : > { %v343_v28 = vadd.f32 1.0, %v559_v26 }
 0x1a6   : > { %564 = vrcp.f32 %v344_v27 }
 0x1a7   : > { %v561_v29 = vpop.eup %560  ;;  %566 = vrcp.f32 %v343_v28 }
 0x1a8   : > { %v563_v30 = vpop.eup %562  ;;  %v346_v32 = vadd.f32 1.0, %v561_v29 }
 0x1a9   : > { %v345_v31 = vadd.f32 1.0, %v563_v30 }
 0x1ab   : > { %568 = vrcp.f32 %v345_v31 }
 0x1ac   : > { %570 = vrcp.f32 %v346_v32 }
 0x1b0   : > { %v565_v33 = vpop.eup %564 }
 0x1b1   : > { %v567_v34 = vpop.eup %566  ;;  %362 = vperm.xlu1 %551, %v565_v33  }
 0x1b2   : > { %357 = vperm.xlu0 %550, %v567_v34  }
 0x1b5   : > { %v569_v35 = vpop.eup %568 }
 0x1b6   : > { %367 = vperm.xlu1 %551, %v569_v35   ;;  %v571_v36 = vpop.eup %570 }
 0x1ba   : > { %372 = vperm.xlu1 %551, %v571_v36  }
 0x230   : > { %v363_v37 = vpop.permute.xlu1 %362 }
 0x231   : > { %v377_v38 = vmul.f32 %v363_v37, %v831_v5  ;;  %v378_v39 = vmul.f32 %v363_v37, %v833_v6  ;;  %v358_v40 = vpop.permute.xlu0 %357 }
 0x232   : > { %v375_v41 = vmul.f32 %v358_v40, %v821_v0  ;;  %v376_v42 = vmul.f32 %v358_v40, %v823_v1 }
 0x233   : > { %385 = vst [vmem:[%s242_s26 + $0x10] sm:$0xff] %v377_v38  ;;  %386 = vst [vmem:[%s242_s26 + $0x18] sm:$0xff] %v378_v39 }
 0x234   : > { %383 = vst [vmem:[%s242_s26] sm:$0xff] %v375_v41  ;;  %384 = vst [vmem:[%s242_s26 + $0x8] sm:$0xff] %v376_v42 }
 0x235   : > { %v368_v43 = vpop.permute.xlu1 %367 }
 0x236   : > { %v379_v44 = vmul.f32 %v368_v43, %v825_v2  ;;  %v380_v5 = vmul.f32 %v368_v43, %v829_v4 }
 0x238   : > { %387 = vst [vmem:[%s242_s26 + $0x20] sm:$0xff] %v379_v44  ;;  %388 = vst [vmem:[%s242_s26 + $0x28] sm:$0xff] %v380_v5 }
 0x239   : > { %v373_v0 = vpop.permute.xlu1 %372 }
 0x23a   : > { %v381_v1 = vmul.f32 %v373_v0, %v837_v8  ;;  %v382_v2 = vmul.f32 %v373_v0, %v839_v9 }
 0x23c   : > { %389 = vst [vmem:[%s242_s26 + $0x30] sm:$0xff] %v381_v1  ;;  %390 = vst [vmem:[%s242_s26 + $0x38] sm:$0xff] %v382_v2 }
 0x23d   : > { %615 = shalt.err (!%p612_p2)
}
 0x23e   : > { %s616_s9 = scalar_lea.hbm %s906_s14, 1024  ;;  %s620_s13 = scalar_lea.hbm %s957_s5, 2048 }
 0x23f   : > { %p617_p4 = scmp.ne.s32.totalorder %s906_s14, %s616_s9  ;;  %p621_p9 = scmp.lt.u32.totalorder %s906_s14, %s957_s5 }
 0x240   : > { %p622_p1 = scmp.lt.u32.totalorder %s620_s13, %s616_s9  ;;  %p624_p6 = scmp.lt.u32.totalorder %s616_s9, %s906_s14 }
 0x241   : > { %p618_p5 = pnand %p617_p4, %p964_p11 }
 0x242   : > { %p623_p3 = por %p622_p1, %p621_p9 }
 0x243   : > { %p619_p7 = pneg %p618_p5 }
 0x244   : > { %p625_p12 = por %p624_p6, %p623_p3 }
 0x246   : > { %p626_p13 = pnand %p625_p12, %p619_p7 }
 0x248   : > { %629 = shalt.err (!%p626_p13)
}
 0x249   : > { %s675_s29 = smov 256   ;;  %s676_s25 = smov 16  }
 0x24a   : > { %501 = dma.vmem_to_hbm [thread:$0]  (%p964_p11), %s901_s28, 1024, %s906_s14, %s392_s22, %s675_s29, %s675_s29, %s676_s25  }
 0x24b PF: > { %s420_s12 = sand.u32 1, %s656_s18   ;;  %p965_p8 = scmp.ne.s32.totalorder %s962_s6, 0 }
 0x24c   : > { %p966_p10 = scmp.ge.s32.totalorder %s668_s21, 2  ;;  %s421_s15 = scalar_lea.sflag [#allocation4], %s420_s12 }
 0x24e   : > { %p508_p0 = pnand %p966_p10, %p965_p8 }
 0x250   : > { %651 = dma.done.wait (!%p508_p0), %s421_s15, 1024  }
 0x251   : > { %653 = vsyncadd (!%p508_p0), %s421_s15, 4294966272  ;;  %p18_p2 = scmp.ge.s32.totalorder %s732_s24, 4   ;;  %s967_s18 = smov %s660_s19 }
 0x252   : > { %s968_s19 = smov %s664_s20  ;;  %s969_s20 = smov %s744_s27 }
 0x253   : > { %s970_s21 = smov %s732_s24  ;;  %20 = sbr.rel (!%p18_p2) target bundleno = 5 (0x5), region = 85 }
 0x25a   :  { %426 = vsyncpa [#allocation3], 1 }
 0x25b   :  { %428 = vsyncpa [#allocation3 + $0x1], 1 }
 0x25c   :  { %429 = vsyncpa [#allocation4], 1 }
 0x25d   :  { %431 = vsyncpa [#allocation4 + $0x1], 1 }

</bundles_post_ra>
